<compile_context>
chip_gen: v7x
topology: tpu7x:2x2x1
jax: 0.10.0
libtpu: 0.0.40
codegen_flags: <defaults>
</compile_context>

<pallas_src>
import jax
import jax.numpy as jnp
import numpy as np
from jax.experimental import pallas as pl
from jax.experimental.pallas import tpu as pltpu


def bi_attention_kernel(v_ref, q_ref, wv_ref, bv_ref, wq_ref, bq_ref,
                        hmat_ref, hbias_ref, etb_ref, ftb_ref, emat_ref,
                        p_ref, logits_ref):
    """One grid step processes a block of `Bb` batch elements.

    Refs (all VMEM):
      v_ref     (Bb*V, XD)   visual features, batch flattened into sublanes
      q_ref     (Bb*Q, YD)   question features, batch flattened into sublanes
      wv_ref    (XD, HK), bv_ref (1, HK)    weight-normed FCNet v_net
      wq_ref    (YD, HK), bq_ref (1, HK)    weight-normed FCNet q_net
      hmat_ref  (G, HK),  hbias_ref (G, 1)  weight-normed BCNet h_mat / h_bias
      etb_ref   (Bb*VQ, Bb*V)  block-diag one-hot: ETB[b*VQ+i*Q+j, b*V+i] = 1
      ftb_ref   (Bb*VQ, Bb*Q)  block-diag one-hot: FTB[b*VQ+i*Q+j, b*Q+j] = 1
      emat_ref  (V, VQ)        one-hot: E[i, i*Q+j] = 1 (expands v row-mask)
    Outputs (lane-dense, VQ = 128 lanes here):
      p_ref, logits_ref   (Bb*G, VQ)   row index = b*G + h
    """
    V, VQ = emat_ref.shape
    Bb = v_ref.shape[0] // V
    G = hmat_ref.shape[0]
    neg_inf = jnp.float32(-jnp.inf)

    v_raw = v_ref[...]                                           # (Bb*V, XD)
    q_raw = q_ref[...]                                           # (Bb*Q, YD)

    # Batched FCNet projections for the whole block: one MXU matmul each.
    v_ = jnp.maximum(
        jnp.dot(v_raw, wv_ref[...], preferred_element_type=jnp.float32)
        + bv_ref[...], 0.0)                                      # (Bb*V, HK)
    q_ = jnp.maximum(
        jnp.dot(q_raw, wq_ref[...], preferred_element_type=jnp.float32)
        + bq_ref[...], 0.0)                                      # (Bb*Q, HK)

    # Row abs-sums of the RAW v (all-zero-row mask source, as in the module).
    abs_rows = jnp.sum(jnp.abs(v_raw), axis=1, keepdims=True)    # (Bb*V, 1)

    # Hoisted lane expansion for the whole block (block-diagonal one-hot
    # matmuls -> exact element copies, no reshapes/transposes in-kernel):
    #   m1[b*VQ + i*Q + j, k] = v_[b*V + i, k]
    #   m2[b*VQ + i*Q + j, k] = q_[b*Q + j, k]
    m1 = jnp.dot(etb_ref[...], v_, preferred_element_type=jnp.float32)
    m2 = jnp.dot(ftb_ref[...], q_, preferred_element_type=jnp.float32)
    rt = m1 * m2                                                 # (Bb*VQ, HK)

    hmat = hmat_ref[...]                                         # (G, HK)
    hbias = hbias_ref[...]                                       # (G, 1)
    emat = emat_ref[...]                                         # (V, VQ)

    # Per batch element: one (G, HK) x (HK, VQ) MXU contraction + bias + mask,
    # written straight into the lane-dense logits tile (rows b*G:(b+1)*G).
    for b in range(Bb):                                          # static, small
        rt_b = rt[b * VQ:(b + 1) * VQ, :]                        # (VQ, HK)
        lg_b = jax.lax.dot_general(hmat, rt_b, (((1,), (1,)), ((), ())),
                                   preferred_element_type=jnp.float32)  # (G,VQ)
        lg_b = lg_b + hbias

        # v_mask: lanes whose raw v row has zero absolute sum -> -inf.
        lane_abs = jnp.sum(abs_rows[b * V:(b + 1) * V, :] * emat,
                           axis=0, keepdims=True)                # (1, VQ)
        lg_b = jnp.where(lane_abs == 0.0, neg_inf, lg_b)

        logits_ref[b * G:(b + 1) * G, :] = lg_b

    # Single full-tile softmax over the flattened (V*Q) lane axis, per (b, h)
    # row; one full-lane, full-sublane store of p for the whole block.
    lg = logits_ref[...]                                         # (Bb*G, VQ)
    m = jnp.max(lg, axis=1, keepdims=True)
    ex = jnp.exp(lg - m)
    s = jnp.sum(ex, axis=1, keepdims=True)
    p_ref[...] = ex * pl.reciprocal(s)         # exact recip (keeps 1e-5 tol)


def _pick_block_b(batch, glimpse, v_num, q_num, max_block=8):
    """Largest divisor of `batch` <= max_block keeping >= 2 grid steps and
    8-aligned sublane block dims; falls back to a single full-batch step."""
    def legal(d):
        if batch // d == 1:
            return True                       # block dims equal full dims
        return ((d * glimpse) % 8 == 0 and (d * v_num) % 8 == 0
                and (d * q_num) % 8 == 0)

    for d in range(min(batch, max_block), 0, -1):
        if batch % d == 0 and batch // d >= 2 and legal(d):
            return d
    return batch


def bi_attention(v, q, params, block_b=None):
    """v: [B, V, XD], q: [B, Q, YD] -> (p [B,G,V,Q], logits [B,G,V,Q])."""
    B, V, XD = v.shape
    _, Q, YD = q.shape
    wv, bv, wq, bq, hmat, hbias = (params["wv"], params["bv"], params["wq"],
                                   params["bq"], params["hmat"], params["hbias"])
    HK = wv.shape[1]
    G = hmat.shape[0]
    VQ = V * Q

    if block_b is None:
        block_b = _pick_block_b(B, G, V, Q)
    assert B % block_b == 0, "block_b must divide the batch"
    grid = (B // block_b,)

    # Layout plumbing in the wrapper: batch flattened into the sublane axis so
    # the kernel works on plain 2-D tiles with no in-kernel reshapes.
    v2 = v.reshape(B * V, XD)
    q2 = q.reshape(B * Q, YD)

    # One-hot expansion matrices mapping row indices onto the flattened V*Q
    # lanes; block-diagonal over the batch block so the expansion is a single
    # matmul for the whole block.
    e_np = np.repeat(np.eye(V, dtype=np.float32), Q, axis=1)          # (V, VQ)
    et = np.ascontiguousarray(e_np.T)                                 # (VQ, V)
    ft = np.ascontiguousarray(
        np.tile(np.eye(Q, dtype=np.float32), (1, V)).T)               # (VQ, Q)
    eye_b = np.eye(block_b, dtype=np.float32)
    etb = jnp.asarray(np.kron(eye_b, et))                       # (Bb*VQ, Bb*V)
    ftb = jnp.asarray(np.kron(eye_b, ft))                       # (Bb*VQ, Bb*Q)
    emat = jnp.asarray(e_np)                                    # (V, VQ)

    grid_spec = pltpu.PrefetchScalarGridSpec(
        num_scalar_prefetch=0,
        grid=grid,
        in_specs=[
            pl.BlockSpec((block_b * V, XD), lambda b: (b, 0)),
            pl.BlockSpec((block_b * Q, YD), lambda b: (b, 0)),
            pl.BlockSpec((XD, HK), lambda b: (0, 0)),
            pl.BlockSpec((1, HK), lambda b: (0, 0)),
            pl.BlockSpec((YD, HK), lambda b: (0, 0)),
            pl.BlockSpec((1, HK), lambda b: (0, 0)),
            pl.BlockSpec((G, HK), lambda b: (0, 0)),
            pl.BlockSpec((G, 1), lambda b: (0, 0)),
            pl.BlockSpec((block_b * VQ, block_b * V), lambda b: (0, 0)),
            pl.BlockSpec((block_b * VQ, block_b * Q), lambda b: (0, 0)),
            pl.BlockSpec((V, VQ), lambda b: (0, 0)),
        ],
        out_specs=[
            pl.BlockSpec((block_b * G, VQ), lambda b: (b, 0)),
            pl.BlockSpec((block_b * G, VQ), lambda b: (b, 0)),
        ],
    )

    p_flat, logits_flat = pl.pallas_call(
        bi_attention_kernel,
        out_shape=(jax.ShapeDtypeStruct((B * G, VQ), jnp.float32),
                   jax.ShapeDtypeStruct((B * G, VQ), jnp.float32)),
        grid_spec=grid_spec,
        compiler_params=pltpu.CompilerParams(dimension_semantics=("parallel",)),
    )(v2, q2, wv, bv, wq, bq, hmat, hbias, etb, ftb, emat)

    # Reshape back to the module's (B, G, V, Q) layout outside the kernel.
    return p_flat.reshape(B, G, V, Q), logits_flat.reshape(B, G, V, Q)


def _weight_norm(w_raw, g):
    # weight_norm(..., dim=None): scalar g over the full-tensor Frobenius norm.
    return g * w_raw / jnp.linalg.norm(w_raw)


def init_params(key, x_dim, y_dim, z_dim, glimpse, k=3):
    HK = z_dim * k
    ks = jax.random.split(key, 8)
    # FCNet v_net: weight_norm(Linear(x_dim, z_dim*k), dim=None) + ReLU
    wv_raw = jax.random.normal(ks[0], (x_dim, HK), jnp.float32) * 0.1
    gv = jnp.float32(1.0) + 0.25 * jax.random.normal(ks[1], (), jnp.float32)
    bv = jax.random.normal(ks[2], (1, HK), jnp.float32) * 0.1
    # FCNet q_net
    wq_raw = jax.random.normal(ks[3], (y_dim, HK), jnp.float32) * 0.1
    gq = jnp.float32(1.0) + 0.25 * jax.random.normal(ks[4], (), jnp.float32)
    bq = jax.random.normal(ks[5], (1, HK), jnp.float32) * 0.1
    # BCNet h_mat: Parameter(1, glimpse, 1, HK).normal_(), weight-normed (dim=None)
    hmat_raw = jax.random.normal(ks[6], (glimpse, HK), jnp.float32)
    gh = jnp.float32(1.0)
    # BCNet h_bias: Parameter(1, glimpse, 1, 1).normal_()
    hbias = jax.random.normal(ks[7], (glimpse, 1), jnp.float32)
    return {
        "wv": _weight_norm(wv_raw, gv), "bv": bv,
        "wq": _weight_norm(wq_raw, gq), "bq": bq,
        "hmat": _weight_norm(hmat_raw, gh), "hbias": hbias,
    }


def reference(v, q, params):
    """Pure-JAX reference mirroring the PyTorch forward (eval mode)."""
    wv, bv, wq, bq, hmat, hbias = (params["wv"], params["bv"], params["wq"],
                                   params["bq"], params["hmat"], params["hbias"])
    v_ = jax.nn.relu(jnp.einsum("bvx,xk->bvk", v, wv) + bv[0])
    q_ = jax.nn.relu(jnp.einsum("bqy,yk->bqk", q, wq) + bq[0])
    logits = jnp.einsum("hk,bvk,bqk->bhvq", hmat, v_, q_) + hbias[None, :, :, None]
    mask = (jnp.sum(jnp.abs(v), axis=2) == 0.0)                # (B, V)
    logits = jnp.where(mask[:, None, :, None], -jnp.inf, logits)
    B, G, V, Q = logits.shape
    p = jax.nn.softmax(logits.reshape(B, G, V * Q), axis=2).reshape(B, G, V, Q)
    return p, logits


if __name__ == "__main__":
    # Small shapes consistent with the module: v=[B, V, x_dim], q=[B, Q, y_dim]
    # (B=4 so the demo exercises both batched blocks and >= 2 grid steps.)
    B, V, Q = 4, 16, 8
    x_dim, y_dim, z_dim, glimpse = 32, 32, 16, 4

    key = jax.random.PRNGKey(0)
    kv, kq, kp = jax.random.split(key, 3)
    v = jax.random.normal(kv, (B, V, x_dim), jnp.float32)
    q = jax.random.normal(kq, (B, Q, y_dim), jnp.float32)
    # Zero out one visual region so the v_mask / -inf path is exercised.
    v = v.at[:, V - 1, :].set(0.0)

    params = init_params(kp, x_dim, y_dim, z_dim, glimpse)

    p_out, logits_out = jax.block_until_ready(bi_attention(v, q, params))
    p_ref, logits_ref = reference(v, q, params)

    assert p_out.shape == (B, glimpse, V, Q)
    assert logits_out.shape == (B, glimpse, V, Q)
    assert np.allclose(np.asarray(p_out), np.asarray(p_ref), rtol=1e-5, atol=1e-5)
    assert np.allclose(np.asarray(logits_out), np.asarray(logits_ref),
                       rtol=1e-5, atol=1e-5)

    print("KERNEL_OK")
</pallas_src>

<mosaic_0001>
module attributes {stable_mosaic.version = 11 : i64} {
  func.func @bi_attention_kernel(%arg0: i32, %arg1: memref<32x32xf32, #tpu.memory_space<vmem>>, %arg2: memref<16x32xf32, #tpu.memory_space<vmem>>, %arg3: memref<32x48xf32, #tpu.memory_space<vmem>>, %arg4: memref<1x48xf32, #tpu.memory_space<vmem>>, %arg5: memref<32x48xf32, #tpu.memory_space<vmem>>, %arg6: memref<1x48xf32, #tpu.memory_space<vmem>>, %arg7: memref<4x48xf32, #tpu.memory_space<vmem>>, %arg8: memref<4x1xf32, #tpu.memory_space<vmem>>, %arg9: memref<256x32xf32, #tpu.memory_space<vmem>>, %arg10: memref<256x16xf32, #tpu.memory_space<vmem>>, %arg11: memref<16x128xf32, #tpu.memory_space<vmem>>, %arg12: memref<8x128xf32, #tpu.memory_space<vmem>>, %arg13: memref<8x128xf32, #tpu.memory_space<vmem>>) attributes {dimension_semantics = [#tpu.dimension_semantics<parallel>], iteration_bounds = array<i64: 2>, scalar_prefetch = 0 : i64, scratch_operands = 0 : i64, tpu.core_type = #tpu.core_type<tc>, window_params = [{transform_indices = @transform_0, window_bounds = array<i64: 32, 32>}, {transform_indices = @transform_1, window_bounds = array<i64: 16, 32>}, {pipeline_mode = #tpu.pipeline_mode<synchronous>, transform_indices = @transform_2, window_bounds = array<i64: 32, 48>}, {pipeline_mode = #tpu.pipeline_mode<synchronous>, transform_indices = @transform_3, window_bounds = array<i64: 1, 48>}, {pipeline_mode = #tpu.pipeline_mode<synchronous>, transform_indices = @transform_4, window_bounds = array<i64: 32, 48>}, {pipeline_mode = #tpu.pipeline_mode<synchronous>, transform_indices = @transform_5, window_bounds = array<i64: 1, 48>}, {pipeline_mode = #tpu.pipeline_mode<synchronous>, transform_indices = @transform_6, window_bounds = array<i64: 4, 48>}, {pipeline_mode = #tpu.pipeline_mode<synchronous>, transform_indices = @transform_7, window_bounds = array<i64: 4, 1>}, {pipeline_mode = #tpu.pipeline_mode<synchronous>, transform_indices = @transform_8, window_bounds = array<i64: 256, 32>}, {pipeline_mode = #tpu.pipeline_mode<synchronous>, transform_indices = @transform_9, window_bounds = array<i64: 256, 16>}, {pipeline_mode = #tpu.pipeline_mode<synchronous>, transform_indices = @transform_10, window_bounds = array<i64: 16, 128>}, {transform_indices = @transform_11, window_bounds = array<i64: 8, 128>}, {transform_indices = @transform_12, window_bounds = array<i64: 8, 128>}]} {
    %c0 = arith.constant 0 : index
    %c0_0 = arith.constant 0 : index
    %0 = vector.load %arg1[%c0, %c0_0] : memref<32x32xf32, #tpu.memory_space<vmem>>, vector<32x32xf32>
    %c0_1 = arith.constant 0 : index
    %c0_2 = arith.constant 0 : index
    %1 = vector.load %arg2[%c0_1, %c0_2] : memref<16x32xf32, #tpu.memory_space<vmem>>, vector<16x32xf32>
    %c0_3 = arith.constant 0 : index
    %c0_4 = arith.constant 0 : index
    %2 = vector.load %arg3[%c0_3, %c0_4] : memref<32x48xf32, #tpu.memory_space<vmem>>, vector<32x48xf32>
    %cst = arith.constant dense<0.000000e+00> : vector<32x48xf32>
    %3 = tpu.matmul %0, %2, %cst {dimension_numbers = #tpu.dot_dimension_numbers<[1], [0], [0], [1], [0, 0, 1, 1], [], []>} : vector<32x32xf32>, vector<32x48xf32>, vector<32x48xf32> -> vector<32x48xf32>
    %c0_5 = arith.constant 0 : index
    %c0_6 = arith.constant 0 : index
    %4 = vector.load %arg4[%c0_5, %c0_6] : memref<1x48xf32, #tpu.memory_space<vmem>>, vector<1x48xf32>
    %5 = vector.broadcast %4 : vector<1x48xf32> to vector<32x48xf32>
    %6 = arith.addf %3, %5 : vector<32x48xf32>
    %cst_7 = arith.constant 0.000000e+00 : f32
    %7 = vector.broadcast %cst_7 : f32 to vector<32x48xf32>
    %8 = arith.maximumf %6, %7 : vector<32x48xf32>
    %c0_8 = arith.constant 0 : index
    %c0_9 = arith.constant 0 : index
    %9 = vector.load %arg5[%c0_8, %c0_9] : memref<32x48xf32, #tpu.memory_space<vmem>>, vector<32x48xf32>
    %cst_10 = arith.constant dense<0.000000e+00> : vector<16x48xf32>
    %10 = tpu.matmul %1, %9, %cst_10 {dimension_numbers = #tpu.dot_dimension_numbers<[1], [0], [0], [1], [0, 0, 1, 1], [], []>} : vector<16x32xf32>, vector<32x48xf32>, vector<16x48xf32> -> vector<16x48xf32>
    %c0_11 = arith.constant 0 : index
    %c0_12 = arith.constant 0 : index
    %11 = vector.load %arg6[%c0_11, %c0_12] : memref<1x48xf32, #tpu.memory_space<vmem>>, vector<1x48xf32>
    %12 = vector.broadcast %11 : vector<1x48xf32> to vector<16x48xf32>
    %13 = arith.addf %10, %12 : vector<16x48xf32>
    %cst_13 = arith.constant 0.000000e+00 : f32
    %14 = vector.broadcast %cst_13 : f32 to vector<16x48xf32>
    %15 = arith.maximumf %13, %14 : vector<16x48xf32>
    %16 = math.absf %0 : vector<32x32xf32>
    %cst_14 = arith.constant dense<0.000000e+00> : vector<32xf32>
    %17 = vector.multi_reduction <add>, %16, %cst_14 [1] : vector<32x32xf32> to vector<32xf32>
    %18 = vector.shape_cast %17 : vector<32xf32> to vector<32x1xf32>
    %c0_15 = arith.constant 0 : index
    %c0_16 = arith.constant 0 : index
    %19 = vector.load %arg9[%c0_15, %c0_16] : memref<256x32xf32, #tpu.memory_space<vmem>>, vector<256x32xf32>
    %cst_17 = arith.constant dense<0.000000e+00> : vector<256x48xf32>
    %20 = tpu.matmul %19, %8, %cst_17 {dimension_numbers = #tpu.dot_dimension_numbers<[1], [0], [0], [1], [0, 0, 1, 1], [], []>} : vector<256x32xf32>, vector<32x48xf32>, vector<256x48xf32> -> vector<256x48xf32>
    %c0_18 = arith.constant 0 : index
    %c0_19 = arith.constant 0 : index
    %21 = vector.load %arg10[%c0_18, %c0_19] : memref<256x16xf32, #tpu.memory_space<vmem>>, vector<256x16xf32>
    %cst_20 = arith.constant dense<0.000000e+00> : vector<256x48xf32>
    %22 = tpu.matmul %21, %15, %cst_20 {dimension_numbers = #tpu.dot_dimension_numbers<[1], [0], [0], [1], [0, 0, 1, 1], [], []>} : vector<256x16xf32>, vector<16x48xf32>, vector<256x48xf32> -> vector<256x48xf32>
    %23 = arith.mulf %20, %22 : vector<256x48xf32>
    %c0_21 = arith.constant 0 : index
    %c0_22 = arith.constant 0 : index
    %24 = vector.load %arg7[%c0_21, %c0_22] : memref<4x48xf32, #tpu.memory_space<vmem>>, vector<4x48xf32>
    %c0_23 = arith.constant 0 : index
    %c0_24 = arith.constant 0 : index
    %25 = vector.load %arg8[%c0_23, %c0_24] : memref<4x1xf32, #tpu.memory_space<vmem>>, vector<4x1xf32>
    %c0_25 = arith.constant 0 : index
    %c0_26 = arith.constant 0 : index
    %26 = vector.load %arg11[%c0_25, %c0_26] : memref<16x128xf32, #tpu.memory_space<vmem>>, vector<16x128xf32>
    %27 = vector.extract_strided_slice %23 {offsets = [0, 0], sizes = [128, 48], strides = [1, 1]} : vector<256x48xf32> to vector<128x48xf32>
    %cst_27 = arith.constant dense<0.000000e+00> : vector<4x128xf32>
    %28 = tpu.matmul %24, %27, %cst_27 {dimension_numbers = #tpu.dot_dimension_numbers<[1], [1], [0], [0], [0, 0, 1, 0], [], []>} : vector<4x48xf32>, vector<128x48xf32>, vector<4x128xf32> -> vector<4x128xf32>
    %29 = vector.broadcast %25 : vector<4x1xf32> to vector<4x128xf32>
    %30 = arith.addf %28, %29 : vector<4x128xf32>
    %31 = vector.extract_strided_slice %18 {offsets = [0, 0], sizes = [16, 1], strides = [1, 1]} : vector<32x1xf32> to vector<16x1xf32>
    %32 = vector.broadcast %31 : vector<16x1xf32> to vector<16x128xf32>
    %33 = arith.mulf %32, %26 : vector<16x128xf32>
    %cst_28 = arith.constant dense<0.000000e+00> : vector<128xf32>
    %34 = vector.multi_reduction <add>, %33, %cst_28 [0] : vector<16x128xf32> to vector<128xf32>
    %35 = vector.shape_cast %34 : vector<128xf32> to vector<1x128xf32>
    %cst_29 = arith.constant 0.000000e+00 : f32
    %36 = vector.broadcast %cst_29 : f32 to vector<1x128xf32>
    %37 = arith.cmpf oeq, %35, %36 : vector<1x128xf32>
    %cst_30 = arith.constant 0xFF800000 : f32
    %38 = vector.shape_cast %37 : vector<1x128xi1> to vector<1x128xi1>
    %39 = vector.broadcast %38 : vector<1x128xi1> to vector<4x128xi1>
    %40 = vector.broadcast %cst_30 : f32 to vector<4x128xf32>
    %41 = arith.select %39, %40, %30 : vector<4x128xi1>, vector<4x128xf32>
    %c0_31 = arith.constant 0 : index
    %c0_32 = arith.constant 0 : index
    %42 = vector.load %arg13[%c0_31, %c0_32] : memref<8x128xf32, #tpu.memory_space<vmem>>, vector<4x128xf32>
    tpu.vector_store %arg13[%c0_31, %c0_32], %41 {strides = array<i32>} : memref<8x128xf32, #tpu.memory_space<vmem>>, vector<4x128xf32>,
    %43 = vector.extract_strided_slice %23 {offsets = [128, 0], sizes = [128, 48], strides = [1, 1]} : vector<256x48xf32> to vector<128x48xf32>
    %cst_33 = arith.constant dense<0.000000e+00> : vector<4x128xf32>
    %44 = tpu.matmul %24, %43, %cst_33 {dimension_numbers = #tpu.dot_dimension_numbers<[1], [1], [0], [0], [0, 0, 1, 0], [], []>} : vector<4x48xf32>, vector<128x48xf32>, vector<4x128xf32> -> vector<4x128xf32>
    %45 = vector.broadcast %25 : vector<4x1xf32> to vector<4x128xf32>
    %46 = arith.addf %44, %45 : vector<4x128xf32>
    %47 = vector.extract_strided_slice %18 {offsets = [16, 0], sizes = [16, 1], strides = [1, 1]} : vector<32x1xf32> to vector<16x1xf32>
    %48 = vector.broadcast %47 : vector<16x1xf32> to vector<16x128xf32>
    %49 = arith.mulf %48, %26 : vector<16x128xf32>
    %cst_34 = arith.constant dense<0.000000e+00> : vector<128xf32>
    %50 = vector.multi_reduction <add>, %49, %cst_34 [0] : vector<16x128xf32> to vector<128xf32>
    %51 = vector.shape_cast %50 : vector<128xf32> to vector<1x128xf32>
    %cst_35 = arith.constant 0.000000e+00 : f32
    %52 = vector.broadcast %cst_35 : f32 to vector<1x128xf32>
    %53 = arith.cmpf oeq, %51, %52 : vector<1x128xf32>
    %cst_36 = arith.constant 0xFF800000 : f32
    %54 = vector.shape_cast %53 : vector<1x128xi1> to vector<1x128xi1>
    %55 = vector.broadcast %54 : vector<1x128xi1> to vector<4x128xi1>
    %56 = vector.broadcast %cst_36 : f32 to vector<4x128xf32>
    %57 = arith.select %55, %56, %46 : vector<4x128xi1>, vector<4x128xf32>
    %c4 = arith.constant 4 : index
    %c0_37 = arith.constant 0 : index
    %58 = vector.load %arg13[%c4, %c0_37] : memref<8x128xf32, #tpu.memory_space<vmem>>, vector<4x128xf32>
    tpu.vector_store %arg13[%c4, %c0_37], %57 {strides = array<i32>} : memref<8x128xf32, #tpu.memory_space<vmem>>, vector<4x128xf32>,
    %c0_38 = arith.constant 0 : index
    %c0_39 = arith.constant 0 : index
    %59 = vector.load %arg13[%c0_38, %c0_39] : memref<8x128xf32, #tpu.memory_space<vmem>>, vector<8x128xf32>
    %cst_40 = arith.constant dense<0xFF800000> : vector<8xf32>
    %60 = vector.multi_reduction <maximumf>, %59, %cst_40 [1] : vector<8x128xf32> to vector<8xf32>
    %61 = vector.shape_cast %60 : vector<8xf32> to vector<8x1xf32>
    %62 = vector.broadcast %61 : vector<8x1xf32> to vector<8x128xf32>
    %63 = arith.subf %59, %62 : vector<8x128xf32>
    %64 = math.exp %63 : vector<8x128xf32>
    %cst_41 = arith.constant dense<0.000000e+00> : vector<8xf32>
    %65 = vector.multi_reduction <add>, %64, %cst_41 [1] : vector<8x128xf32> to vector<8xf32>
    %66 = vector.shape_cast %65 : vector<8xf32> to vector<8x1xf32>
    %67 = tpu.reciprocal %66 : vector<8x1xf32> -> vector<8x1xf32>
    %68 = vector.broadcast %67 : vector<8x1xf32> to vector<8x128xf32>
    %69 = arith.mulf %64, %68 : vector<8x128xf32>
    %c0_42 = arith.constant 0 : index
    %c0_43 = arith.constant 0 : index
    %70 = vector.load %arg12[%c0_42, %c0_43] : memref<8x128xf32, #tpu.memory_space<vmem>>, vector<8x128xf32>
    tpu.vector_store %arg12[%c0_42, %c0_43], %69 {strides = array<i32>} : memref<8x128xf32, #tpu.memory_space<vmem>>, vector<8x128xf32>,
    return
  }
  func.func @transform_0(%arg0: i32) -> (i32, i32) {
    %c0_i32 = arith.constant 0 : i32
    %c0_i32_0 = arith.constant 0 : i32
    return %arg0, %c0_i32 : i32, i32
  }
  func.func @transform_1(%arg0: i32) -> (i32, i32) {
    %c0_i32 = arith.constant 0 : i32
    %c0_i32_0 = arith.constant 0 : i32
    return %arg0, %c0_i32 : i32, i32
  }
  func.func @transform_2(%arg0: i32) -> (i32, i32) {
    %c0_i32 = arith.constant 0 : i32
    %c0_i32_0 = arith.constant 0 : i32
    %c0_i32_1 = arith.constant 0 : i32
    return %c0_i32, %c0_i32_0 : i32, i32
  }
  func.func @transform_3(%arg0: i32) -> (i32, i32) {
    %c0_i32 = arith.constant 0 : i32
    %c0_i32_0 = arith.constant 0 : i32
    %c0_i32_1 = arith.constant 0 : i32
    return %c0_i32, %c0_i32_0 : i32, i32
  }
  func.func @transform_4(%arg0: i32) -> (i32, i32) {
    %c0_i32 = arith.constant 0 : i32
    %c0_i32_0 = arith.constant 0 : i32
    %c0_i32_1 = arith.constant 0 : i32
    return %c0_i32, %c0_i32_0 : i32, i32
  }
  func.func @transform_5(%arg0: i32) -> (i32, i32) {
    %c0_i32 = arith.constant 0 : i32
    %c0_i32_0 = arith.constant 0 : i32
    %c0_i32_1 = arith.constant 0 : i32
    return %c0_i32, %c0_i32_0 : i32, i32
  }
  func.func @transform_6(%arg0: i32) -> (i32, i32) {
    %c0_i32 = arith.constant 0 : i32
    %c0_i32_0 = arith.constant 0 : i32
    %c0_i32_1 = arith.constant 0 : i32
    return %c0_i32, %c0_i32_0 : i32, i32
  }
  func.func @transform_7(%arg0: i32) -> (i32, i32) {
    %c0_i32 = arith.constant 0 : i32
    %c0_i32_0 = arith.constant 0 : i32
    %c0_i32_1 = arith.constant 0 : i32
    return %c0_i32, %c0_i32_0 : i32, i32
  }
  func.func @transform_8(%arg0: i32) -> (i32, i32) {
    %c0_i32 = arith.constant 0 : i32
    %c0_i32_0 = arith.constant 0 : i32
    %c0_i32_1 = arith.constant 0 : i32
    return %c0_i32, %c0_i32_0 : i32, i32
  }
  func.func @transform_9(%arg0: i32) -> (i32, i32) {
    %c0_i32 = arith.constant 0 : i32
    %c0_i32_0 = arith.constant 0 : i32
    %c0_i32_1 = arith.constant 0 : i32
    return %c0_i32, %c0_i32_0 : i32, i32
  }
  func.func @transform_10(%arg0: i32) -> (i32, i32) {
    %c0_i32 = arith.constant 0 : i32
    %c0_i32_0 = arith.constant 0 : i32
    %c0_i32_1 = arith.constant 0 : i32
    return %c0_i32, %c0_i32_0 : i32, i32
  }
  func.func @transform_11(%arg0: i32) -> (i32, i32) {
    %c0_i32 = arith.constant 0 : i32
    %c0_i32_0 = arith.constant 0 : i32
    return %arg0, %c0_i32 : i32, i32
  }
  func.func @transform_12(%arg0: i32) -> (i32, i32) {
    %c0_i32 = arith.constant 0 : i32
    %c0_i32_0 = arith.constant 0 : i32
    return %arg0, %c0_i32 : i32, i32
  }
}

</mosaic_0001>

<bundles_post_ra>
// kernel: tpu_custom_call.1
= control target key start
LH: loop header
LB: loop body
LE: loop exit
PB: predicated region body
PF: predicated region fallthrough
CT: control target
= control target key end

     0   :  { %18 = vsyncpa [#allocation3], 0  ;;  %s3123_s0 = inlined_call_operand.vmem [shape: f32[64,32], index: 0, kind: input, shape index: {}]   ;;  %s3124_s1 = inlined_call_operand.vmem [shape: f32[32,32], index: 1, kind: input, shape index: {}]   ;;  %s3125_s2 = inlined_call_operand.vmem [shape: f32[32,48], index: 2, kind: input, shape index: {}]   ;;  %s3126_s3 = inlined_call_operand.vmem [shape: f32[1,48], index: 3, kind: input, shape index: {}]   ;;  %s3127_s4 = inlined_call_operand.vmem [shape: f32[32,48], index: 4, kind: input, shape index: {}]   ;;  %s3128_s5 = inlined_call_operand.vmem [shape: f32[1,48], index: 5, kind: input, shape index: {}]   ;;  %s3129_s6 = inlined_call_operand.vmem [shape: f32[4,48], index: 6, kind: input, shape index: {}]   ;;  %s3130_s7 = inlined_call_operand.vmem [shape: f32[4,1], index: 7, kind: input, shape index: {}]   ;;  %s3131_s8 = inlined_call_operand.vmem [shape: f32[256,32], index: 8, kind: input, shape index: {}]   ;;  %s3132_s9 = inlined_call_operand.vmem [shape: f32[256,16], index: 9, kind: input, shape index: {}]   ;;  %s3133_s10 = inlined_call_operand.vmem [shape: f32[16,128], index: 10, kind: input, shape index: {}]   ;;  %s3134_s11 = inlined_call_operand.hbm [shape: f32[16,128], index: 11, kind: output, shape index: {0}]   ;;  %s3135_s12 = inlined_call_operand.hbm [shape: f32[16,128], index: 12, kind: output, shape index: {1}]  }
   0x1   :  { %20 = vsyncpa [#allocation3 + $0x1], 0 }
   0x2   :  { %21 = vsyncpa [#allocation5], 0 }
   0x3   :  { %23 = vsyncpa [#allocation5 + $0x1], 0  ;;  %s2593_s21 = smov 0   ;;  %s2595_s22 = smov 0  }
   0x4   :  { %s2597_s23 = smov 0   ;;  %s2599_s24 = smov 0  }
   0x5 LB: > { %3141 = sst [smem:[#allocation8_spill]] %s2516_s23  ;;  %s2614_s25 = sadd.s32 4294967295, %s2520_s24   ;;  %s2520_s24 = sphi %s2599_s24, %s3150_s24   ;;  %s2516_s23 = sphi %s2597_s23, %s3152_s23   ;;  %s2512_s22 = sphi %s2595_s22, %s3154_s22   ;;  %s2508_s21 = sphi %s2593_s21, %s3153_s21  }
   0x6   : > { %s1838_s26 = sadd.s32 4294967294, %s2520_s24   ;;  %s2618_s27 = sadd.s32 1, %s2520_s24  }
   0x7   : > { %3142 = sst [smem:[#allocation9_spill]] %s2618_s27  ;;  %s277_s28 = sadd.s32 1, %s2516_s23 }
   0x8   : > { %s274_s29 = ssub.s32 %s2520_s24, %s2618_s27  ;;  %p287_p0 = scmp.ne.s32.totalorder %s2516_s23, %s2512_s22 }
   0x9   : > { %p275_p1 = scmp.eq.s32.totalorder %s274_s29, 0  ;;  %p288_p2 = scmp.eq.s32.totalorder %s2614_s25, 1 }
   0xa   : > { %p293_p3 = scmp.ne.s32.totalorder %s2512_s22, %s2508_s21  ;;  %p294_p4 = scmp.eq.s32.totalorder %s1838_s26, 1 }
   0xb   : > { %s2629_s30 = scalar_select %p275_p1, %s2516_s23, %s277_s28  }
   0xc   : > { %p2631_p5 = por %p288_p2, %p287_p0  ;;  %p2635_p6 = por %p294_p4, %p293_p3 }
   0xd   : > { %3143 = sst [smem:[#allocation10_spill]] %s2629_s30  ;;  %p1841_p7 = scmp.ge.s32.totalorder %s2520_s24, 1 }
   0xe   : > { %p383_p8 = scmp.lt.s32.totalorder %s2520_s24, 3 }
  0x10   : > { %p384_p9 = pnand %p1841_p7, %p383_p8 }
  0x11   : > { %v453_v0 = vld [vmem:[%s3125_s2] sm:$0xff] (!%p384_p9)  ;;  %v454_v1 = vld [vmem:[%s3125_s2 + $0x8] sm:$0xff] (!%p384_p9)  ;;  %s1844_s26 = sshll.u32 (!%p384_p9), %s2614_s25, 2  ;;  %s1846_s28 = sshll.u32 (!%p384_p9), %s2614_s25, 1  ;;  %v455_v5 = vld [vmem:[%s3125_s2 + $0x10] sm:$0xff] (!%p384_p9)  ;;  %vm464_vm0 = vcmask (!%p384_p9), 261120  }
  0x12   : > { %387 = sbr.rel (%p384_p9) target bundleno = 1118 (0x45e), region = 64  ;;  %v566_v2 = vld [vmem:[%s3127_s4] sm:$0xff] (!%p384_p9)  ;;  %v2281_v3 = vpack.c.bf16 (!%p384_p9), %v454_v1, %v453_v0  ;;  %v567_v4 = vld [vmem:[%s3127_s4 + $0x8] sm:$0xff] (!%p384_p9)  ;;  %v456_v6 = vld [vmem:[%s3125_s2 + $0x18] sm:$0xff] (!%p384_p9)  ;;  %p436_p10 = scmp.lt.s32.totalorder (!%p384_p9), %s1844_s26, 7  ;;  %vm1061_vm1 = vcmask (!%p384_p9), 130048  }
  0x13   : > { %p442_p11 = scmp.lt.s32.totalorder (!%p384_p9), %s1846_s28, 3  ;;  %v2289_v7 = vpack.c.bf16 (!%p384_p9), %v567_v4, %v566_v2  ;;  %v2285_v8 = vpack.c.bf16 (!%p384_p9), %v456_v6, %v455_v5  ;;  %v568_v9 = vld [vmem:[%s3127_s4 + $0x10] sm:$0xff] (!%p384_p9)  ;;  %v569_v10 = vld [vmem:[%s3127_s4 + $0x18] sm:$0xff] (!%p384_p9)  ;;  %v1029_v18 = vld [vmem:[%s3132_s9] sm:$0xff] (!%p384_p9)  ;;  %vm2523_vm2 = vmmov (!%p384_p9), 0   ;;  %vm1424_vm3 = vcmask (!%p384_p9), 392192  }
  0x14   : > { %2282 = vmatprep.subr.bf16.mxu0 (!%p384_p9), %v2281_v3  ;;  %v2293_v11 = vpack.c.bf16 (!%p384_p9), %v569_v10, %v568_v9  ;;  %v676_v19 = vld [vmem:[%s3131_s8] sm:$0xff] (!%p384_p9)  ;;  %v1030_v43 = vld [vmem:[%s3132_s9 + $0x8] sm:$0xff] (!%p384_p9)  ;;  %v1031_v44 = vld [vmem:[%s3132_s9 + $0x10] sm:$0xff] (!%p384_p9)  ;;  %s2526_s30 = smov (!%p384_p9), [#allocation4]  }
  0x15   : > { %2284 = vmatpush3.bf16.msra.mxu0 (!%p384_p9), %v2281_v3  ;;  %2290 = vmatprep.subr.bf16.mxu1 (!%p384_p9), %v2289_v7  ;;  %v1848_v20 = vld [vmem:[%s3126_s3] ss:$0 sm:$0xff] (!%p384_p9)  ;;  %v677_v45 = vld [vmem:[%s3131_s8 + $0x8] sm:$0xff] (!%p384_p9)  ;;  %v678_v46 = vld [vmem:[%s3131_s8 + $0x10] sm:$0xff] (!%p384_p9) }
  0x16   : > { %2292 = vmatpush3.bf16.msra.mxu1 (!%p384_p9), %v2289_v7  ;;  %2286 = vmatprep.subr.bf16.mxu0 (!%p384_p9), %v2285_v8  ;;  %v1853_v21 = vld [vmem:[%s3128_s5] ss:$0 sm:$0xff] (!%p384_p9)  ;;  %v1032_v47 = vld [vmem:[%s3132_s9 + $0x18] sm:$0xff] (!%p384_p9)  ;;  %v1034_v51 = vld [vmem:[%s3132_s9 + $0x28] sm:$0xff] (!%p384_p9) }
  0x17   : > { %2294 = vmatprep.subr.bf16.mxu1 (!%p384_p9), %v2293_v11  ;;  %v1033_v48 = vld [vmem:[%s3132_s9 + $0x20] sm:$0xff] (!%p384_p9)  ;;  %v679_v49 = vld [vmem:[%s3131_s8 + $0x18] sm:$0xff] (!%p384_p9)  ;;  %v1035_v52 = vld [vmem:[%s3132_s9 + $0x30] sm:$0xff] (!%p384_p9) }
  0x18   : > { %v680_v50 = vld [vmem:[%s3131_s8 + $0x20] sm:$0xff] (!%p384_p9)  ;;  %v681_v53 = vld [vmem:[%s3131_s8 + $0x28] sm:$0xff] (!%p384_p9)  ;;  %v682_v54 = vld [vmem:[%s3131_s8 + $0x30] sm:$0xff] (!%p384_p9) }
  0x19   : > { %s3156_s26 = smov (!%p436_p10, %s1844_s26), 7  ;;  %s3158_s28 = smov (!%p442_p11, %s1846_s28), 3  ;;  %2288 = vmatpush3.bf16.msra.mxu0 %v2285_v8  ;;  %v1036_v55 = vld [vmem:[%s3132_s9 + $0x38] sm:$0xff]  ;;  %v1037_v56 = vld [vmem:[%s3132_s9 + $0x40] sm:$0xff]  ;;  %v1038_v59 = vld [vmem:[%s3132_s9 + $0x48] sm:$0xff] }
  0x1a   : > { %s1845_s23 = sshll.u32 %s3156_s26, 3  ;;  %s1847_s15 = sshll.u32 %s3158_s28, 3  ;;  %2296 = vmatpush3.bf16.msra.mxu1 %v2293_v11  ;;  %v683_v57 = vld [vmem:[%s3131_s8 + $0x38] sm:$0xff]  ;;  %v684_v58 = vld [vmem:[%s3131_s8 + $0x40] sm:$0xff]  ;;  %v1039_v60 = vld [vmem:[%s3132_s9 + $0x50] sm:$0xff] }
  0x1b   : > { %s439_s29 = scalar_lea.vmem %s3123_s0, %s1845_s23  ;;  %s445_s18 = scalar_lea.vmem %s3124_s1, %s1847_s15  ;;  %v685_v61 = vld [vmem:[%s3131_s8 + $0x48] sm:$0xff]  ;;  %v686_v62 = vld [vmem:[%s3131_s8 + $0x50] sm:$0xff]  ;;  %v1040_v63 = vld [vmem:[%s3132_s9 + $0x58] sm:$0xff] }
  0x1c   : > { %v2670_v12 = vld [vmem:[%s439_s29] sm:$0xff]  ;;  %v2677_v13 = vld [vmem:[%s439_s29 + $0x8] sm:$0xff]  ;;  %v2680_v16 = vld [vmem:[%s439_s29 + $0x10] sm:$0xff]  ;;  %s3042_s15 = sand.u32 1, %s2512_s22  }
  0x1d   : > { %2086 = vmatprep.mubr.msk.f32.mxu0 %vm464_vm0, %v2670_v12  ;;  %v451_v14 = vld [vmem:[%s445_s18] sm:$0xff]  ;;  %v452_v15 = vld [vmem:[%s445_s18 + $0x8] sm:$0xff]  ;;  %v2687_v17 = vld [vmem:[%s439_s29 + $0x18] sm:$0xff]  ;;  %s3139_s16 = sshll.u32 %s3042_s15, 3  ;;  %s3140_s18 = sshll.u32 %s2614_s25, 7 }
  0x1e   : > { %2100 = vmatprep.mubr.msk.f32.mxu1 %vm464_vm0, %v451_v14  ;;  %2087 = vmatmul.mubr.msk.f32.vlgmr.msra.gmra.mrb[0].mxu0 %vm464_vm0, %v2677_v13  ;;  %v1041_v0 = vld [vmem:[%s3132_s9 + $0x60] sm:$0xff]  ;;  %v687_v1 = vld [vmem:[%s3131_s8 + $0x58] sm:$0xff]  ;;  %v1042_v3 = vld [vmem:[%s3132_s9 + $0x68] sm:$0xff]  ;;  %s434_s17 = scalar_lea.vmem [#allocation4], %s3139_s16  ;;  %s3053_s19 = scalar_lea.hbm %s3135_s12, %s3140_s18 }
  0x1f   : > { %2101 = vmatmul.mubr.msk.f32.vlgmr.msra.gmra.mrb[0].mxu1 %vm464_vm0, %v452_v15  ;;  %2089 = vmatprep.mubr.msk.f32.mxu0 %vm464_vm0, %v2680_v16  ;;  %v688_v2 = vld [vmem:[%s3131_s8 + $0x60] sm:$0xff]  ;;  %v1043_v4 = vld [vmem:[%s3132_s9 + $0x70] sm:$0xff]  ;;  %v689_v5 = vld [vmem:[%s3131_s8 + $0x68] sm:$0xff]  ;;  %s1735_s20 = sshll.u32 %s434_s17, 4  ;;  %s1709_s23 = scalar_lea.sflag [#allocation5], %s3042_s15  ;;  %s1736_s20 = int_to_ptr.vmem [resolvable:$true] %s1735_s20 }
  0x20   : > { %2163 = vmatprep.mubr.msk.f32.mxu1 %vm1061_vm1, %v1029_v18  ;;  %v690_v6 = vld [vmem:[%s3131_s8 + $0x70] sm:$0xff]  ;;  %v1044_v7 = vld [vmem:[%s3132_s9 + $0x78] sm:$0xff]  ;;  %v1045_v8 = vld [vmem:[%s3132_s9 + $0x80] sm:$0xff]  ;;  %s2426_s27 = scalar_lea.vmem %s1736_s20, 128  ;;  %s2430_s29 = sshll.u32 %s2526_s30, 4  ;;  %s2431_s29 = int_to_ptr.vmem [resolvable:$false] %s2430_s29 }
  0x21   : > { %v691_v9 = vld [vmem:[%s3131_s8 + $0x78] sm:$0xff]  ;;  %v692_v10 = vld [vmem:[%s3131_s8 + $0x80] sm:$0xff]  ;;  %v1046_v11 = vld [vmem:[%s3132_s9 + $0x88] sm:$0xff]  ;;  %p2427_p12 = scmp.ne.s32.totalorder %s1736_s20, %s2426_s27  ;;  %s2432_s16 = scalar_lea.vmem %s2431_s29, 256 }
  0x22   : > { %2090 = vmatmul.mubr.msk.f32.gmra.mrb[2].mxu0 %vm464_vm0, %v2687_v17  ;;  %v1047_v14 = vld [vmem:[%s3132_s9 + $0x90] sm:$0xff]  ;;  %v693_v15 = vld [vmem:[%s3131_s8 + $0x88] sm:$0xff]  ;;  %vm2968_vm4 = vmpackc.low %vm1424_vm3, %vm1424_vm3  ;;  %p2433_p1 = scmp.lt.s32.totalorder %s1736_s20, %s2431_s29  ;;  %p2434_p2 = scmp.lt.s32.totalorder %s2432_s16, %s2426_s27 }
  0x23   : > { %2111 = vmatprep.mubr.msk.f32.mxu0 %vm464_vm0, %v676_v19  ;;  %v694_v18 = vld [vmem:[%s3131_s8 + $0x90] sm:$0xff]  ;;  %v1048_v19 = vld [vmem:[%s3132_s9 + $0x98] sm:$0xff]  ;;  %p2428_p13 = pnand %p2427_p12, %p2631_p5 }
  0x24   : > { %p2435_p3 = por %p2434_p2, %p2433_p1 }
  0x25   : > { %p2429_p0 = pneg %p2428_p13 }
  0x27   : > { %p2436_p4 = pnand %p2435_p3, %p2429_p0 }
  0xf1   : > { %v2088_v22 = vpop.f32.mrb[0].mxu0 }
  0xf2   : > { %v549_v23 = vadd.f32 %v2088_v22, %v1848_v20  ;;  %v543_v24 = vpop.f32.mrb[1].mxu0  ;;  %v2102_v25 = vpop.f32.mrb[0].mxu1  ;;  %v696_v22 = vld [vmem:[%s3131_s8 + $0xa0] sm:$0xff] }
  0xf3   : > { %v544_v26 = vadd.f32 %v1848_v20, %v543_v24  ;;  %v655_v27 = vadd.f32 %v2102_v25, %v1853_v21  ;;  %v649_v28 = vpop.f32.mrb[1].mxu1  ;;  %v1051_v24 = vld [vmem:[%s3132_s9 + $0xb0] sm:$0xff]  ;;  %v697_v25 = vld [vmem:[%s3131_s8 + $0xa8] sm:$0xff] }
  0xf4   : > { %v563_v29 = vmax.f32 %v549_v23, 0.0  ;;  %v650_v30 = vadd.f32 %v1853_v21, %v649_v28  ;;  %v695_v21 = vld [vmem:[%s3131_s8 + $0x98] sm:$0xff]  ;;  %v1050_v23 = vld [vmem:[%s3132_s9 + $0xa8] sm:$0xff]  ;;  %v1053_v28 = vld [vmem:[%s3132_s9 + $0xc0] sm:$0xff] }
  0xf5   : > { %v562_v31 = vmax.f32 %v544_v26, 0.0  ;;  %v659_v32 = vmax.f32 %v655_v27, 0.0  ;;  %v2091_v33 = vpop.f32.mrb[2].mxu0  ;;  %v698_v26 = vld [vmem:[%s3131_s8 + $0xb0] sm:$0xff]  ;;  %v1052_v27 = vld [vmem:[%s3132_s9 + $0xb8] sm:$0xff] }
  0xf6   : > { %v658_v34 = vmax.f32 %v650_v30, 0.0  ;;  %v559_v35 = vadd.f32 %v2091_v33, %v1848_v20  ;;  %v553_v36 = vpop.f32.mrb[3].mxu0  ;;  %v700_v30 = vld [vmem:[%s3131_s8 + $0xc0] sm:$0xff]  ;;  %v701_v33 = vld [vmem:[%s3131_s8 + $0xc8] sm:$0xff] }
  0xf7   : > { %v2297_v37 = vpack.c.bf16 %v563_v29, %v562_v31  ;;  %v554_v38 = vadd.f32 %v1848_v20, %v553_v36  ;;  %v1049_v20 = vld [vmem:[%s3132_s9 + $0xa0] sm:$0xff]  ;;  %v699_v29 = vld [vmem:[%s3131_s8 + $0xb8] sm:$0xff]  ;;  %v1054_v31 = vld [vmem:[%s3132_s9 + $0xc8] sm:$0xff] }
  0xf8   : > { %v2305_v39 = vpack.c.bf16 %v659_v32, %v658_v34  ;;  %v565_v40 = vmax.f32 %v559_v35, 0.0  ;;  %v1055_v32 = vld [vmem:[%s3132_s9 + $0xd0] sm:$0xff]  ;;  %v1056_v35 = vld [vmem:[%s3132_s9 + $0xd8] sm:$0xff]  ;;  %v1057_v36 = vld [vmem:[%s3132_s9 + $0xe0] sm:$0xff] }
  0xf9   : > { %v564_v41 = vmax.f32 %v554_v38, 0.0  ;;  %2298 = vmatprep.subr.bf16.mxu0 %v2297_v37  ;;  %v702_v34 = vld [vmem:[%s3131_s8 + $0xd0] sm:$0xff]  ;;  %v704_v38 = vld [vmem:[%s3131_s8 + $0xe0] sm:$0xff] }
  0xfa   : > { %2300 = vmatpush3.bf16.msra.mxu0 %v2297_v37  ;;  %2306 = vmatprep.subr.bf16.mxu1 %v2305_v39  ;;  %v703_v37 = vld [vmem:[%s3131_s8 + $0xd8] sm:$0xff] }
  0xfb   : > { %v2301_v42 = vpack.c.bf16 %v565_v40, %v564_v41  ;;  %2308 = vmatpush3.bf16.msra.mxu1 %v2305_v39  ;;  %v1058_v39 = vld [vmem:[%s3132_s9 + $0xe8] sm:$0xff]  ;;  %v1059_v40 = vld [vmem:[%s3132_s9 + $0xf0] sm:$0xff] }
  0xfc   : > { %v705_v41 = vld [vmem:[%s3131_s8 + $0xe8] sm:$0xff] }
  0xfd   : > { %2302 = vmatprep.subr.bf16.mxu0 %v2301_v42 }
  0xfe   : > { %2304 = vmatpush3.bf16.msra.mxu0 %v2301_v42  ;;  %2164 = vmatmul.mubr.msk.f32.vlgmr.msra.gmra.mrb[2].mxu1 %vm1061_vm1, %v1030_v43  ;;  %v706_v42 = vld [vmem:[%s3131_s8 + $0xf0] sm:$0xff]  ;;  %v1060_v43 = vld [vmem:[%s3132_s9 + $0xf8] sm:$0xff] }
  0xff   : > { %2166 = vmatprep.mubr.msk.f32.mxu1 %vm1061_vm1, %v1031_v44  ;;  %v707_v44 = vld [vmem:[%s3131_s8 + $0xf8] sm:$0xff] }
 0x101   : > { %2112 = vmatmul.mubr.msk.f32.vlgmr.msra.gmra.mrb[4].mxu0 %vm464_vm0, %v677_v45  ;;  %v2522_v45 = vmov 0.0|0.0  }
 0x102   : > { %2114 = vmatprep.mubr.msk.f32.mxu0 %vm464_vm0, %v678_v46  ;;  %2167 = vmatmul.mubr.msk.f32.gmra.mrb[4].mxu1 %vm1061_vm1, %v1032_v47  ;;  %v2524_v46 = vmov 0.0   ;;  %v660_v47 = vand.u32 2147483647, %v2670_v12 }
 0x103   : > { %2169 = vmatprep.mubr.msk.f32.mxu1 %vm1061_vm1, %v1033_v48  ;;  %2309 = vmatprep.subr.bf16.mxu1 %v2522_v45  ;;  %v662_v48 = vand.u32 2147483647, %v2680_v16  ;;  %v1416_v16 = vld [vmem:[%s3130_s7] sm:$0xf] }
 0x104   : > { %2341 = vmatprep.subr.bf16.mxu0 %v2522_v45 }
 0x105   : > { %2115 = vmatmul.mubr.msk.f32.gmra.mrb[6].mxu0 %vm464_vm0, %v679_v49  ;;  %v664_v49 = vsel %vm464_vm0, %v660_v47, 0.0 }
 0x106   : > { %2117 = vmatprep.mubr.msk.f32.mxu0 %vm464_vm0, %v680_v50  ;;  %2170 = vmatmul.mubr.msk.f32.gmra.mrb[6].mxu1 %vm1061_vm1, %v1034_v51  ;;  %v663_v50 = vand.u32 2147483647, %v2687_v17  ;;  %v661_v51 = vand.u32 2147483647, %v2677_v13 }
 0x107   : > { %2172 = vmatprep.mubr.msk.f32.mxu1 %vm1061_vm1, %v1035_v52  ;;  %665 = vadd.xlane.f32.xlu0 %v664_v49  ;;  %v670_v52 = vsel %vm464_vm0, %v662_v48, 0.0 }
 0x108   : > { %671 = vadd.xlane.f32.xlu1 %v670_v52 }
 0x109   : > { %2118 = vmatmul.mubr.msk.f32.gmra.mrb[8].mxu0 %vm464_vm0, %v681_v53  ;;  %v2525_v53 = vmov 0  }
 0x10a   : > { %2120 = vmatprep.mubr.msk.f32.mxu0 %vm464_vm0, %v682_v54  ;;  %2173 = vmatmul.mubr.msk.f32.gmra.mrb[8].mxu1 %vm1061_vm1, %v1036_v55  ;;  %v667_v54 = vsel %vm464_vm0, %v661_v51, 0.0  ;;  %v673_v55 = vsel %vm464_vm0, %v663_v50, 0.0 }
 0x10b   : > { %2175 = vmatprep.mubr.msk.f32.mxu1 %vm1061_vm1, %v1037_v56  ;;  %2421 = vset.pattern.permute.xlu0 %v2525_v53 }
 0x10c   : > { %668 = vadd.xlane.f32.xlu0 %v667_v54  ;;  %674 = vadd.xlane.f32.xlu1 %v673_v55 }
 0x10d   : > { %2121 = vmatmul.mubr.msk.f32.gmra.mrb[10].mxu0 %vm464_vm0, %v683_v57 }
 0x10e   : > { %2123 = vmatprep.mubr.msk.f32.mxu0 %vm464_vm0, %v684_v58  ;;  %2176 = vmatmul.mubr.msk.f32.gmra.mrb[10].mxu1 %vm1061_vm1, %v1038_v59 }
 0x10f   : > { %2178 = vmatprep.mubr.msk.f32.mxu1 %vm1061_vm1, %v1039_v60 }
 0x111   : > { %2124 = vmatmul.mubr.msk.f32.gmra.mrb[12].mxu0 %vm464_vm0, %v685_v61 }
 0x112   : > { %2126 = vmatprep.mubr.msk.f32.mxu0 %vm464_vm0, %v686_v62  ;;  %2179 = vmatmul.mubr.msk.f32.gmra.mrb[12].mxu1 %vm1061_vm1, %v1040_v63 }
 0x113   : > { %2181 = vmatprep.mubr.msk.f32.mxu1 %vm1061_vm1, %v1041_v0 }
 0x115   : > { %2127 = vmatmul.mubr.msk.f32.gmra.mrb[14].mxu0 %vm464_vm0, %v687_v1 }
 0x116   : > { %2129 = vmatprep.mubr.msk.f32.mxu0 %vm464_vm0, %v688_v2  ;;  %2182 = vmatmul.mubr.msk.f32.gmra.mrb[14].mxu1 %vm1061_vm1, %v1042_v3 }
 0x117   : > { %2184 = vmatprep.mubr.msk.f32.mxu1 %vm1061_vm1, %v1043_v4 }
 0x119   : > { %2130 = vmatmul.mubr.msk.f32.gmra.mrb[16].mxu0 %vm464_vm0, %v689_v5 }
 0x11a   : > { %2132 = vmatprep.mubr.msk.f32.mxu0 %vm464_vm0, %v690_v6  ;;  %2185 = vmatmul.mubr.msk.f32.gmra.mrb[16].mxu1 %vm1061_vm1, %v1044_v7 }
 0x11b   : > { %2187 = vmatprep.mubr.msk.f32.mxu1 %vm1061_vm1, %v1045_v8 }
 0x11d   : > { %2133 = vmatmul.mubr.msk.f32.gmra.mrb[18].mxu0 %vm464_vm0, %v691_v9 }
 0x11e   : > { %2135 = vmatprep.mubr.msk.f32.mxu0 %vm464_vm0, %v692_v10  ;;  %2188 = vmatmul.mubr.msk.f32.gmra.mrb[18].mxu1 %vm1061_vm1, %v1046_v11 }
 0x11f   : > { %2190 = vmatprep.mubr.msk.f32.mxu1 %vm1061_vm1, %v1047_v14 }
 0x121   : > { %2136 = vmatmul.mubr.msk.f32.gmra.mrb[20].mxu0 %vm464_vm0, %v693_v15 }
 0x122   : > { %2138 = vmatprep.mubr.msk.f32.mxu0 %vm464_vm0, %v694_v18  ;;  %2191 = vmatmul.mubr.msk.f32.gmra.mrb[20].mxu1 %vm1061_vm1, %v1048_v19 }
 0x123   : > { %2193 = vmatprep.mubr.msk.f32.mxu1 %vm1061_vm1, %v1049_v20  ;;  %1421 = vperm.xlu0 %2421, %v1416_v16  }
 0x125   : > { %2139 = vmatmul.mubr.msk.f32.gmra.mrb[22].mxu0 %vm464_vm0, %v695_v21 }
 0x126   : > { %2141 = vmatprep.mubr.msk.f32.mxu0 %vm464_vm0, %v696_v22  ;;  %2194 = vmatmul.mubr.msk.f32.gmra.mrb[22].mxu1 %vm1061_vm1, %v1050_v23 }
 0x127   : > { %2196 = vmatprep.mubr.msk.f32.mxu1 %vm1061_vm1, %v1051_v24 }
 0x129   : > { %2142 = vmatmul.mubr.msk.f32.gmra.mrb[24].mxu0 %vm464_vm0, %v697_v25 }
 0x12a   : > { %2144 = vmatprep.mubr.msk.f32.mxu0 %vm464_vm0, %v698_v26  ;;  %2197 = vmatmul.mubr.msk.f32.gmra.mrb[24].mxu1 %vm1061_vm1, %v1052_v27 }
 0x12b   : > { %2199 = vmatprep.mubr.msk.f32.mxu1 %vm1061_vm1, %v1053_v28 }
 0x12d   : > { %2145 = vmatmul.mubr.msk.f32.gmra.mrb[26].mxu0 %vm464_vm0, %v699_v29 }
 0x12e   : > { %2147 = vmatprep.mubr.msk.f32.mxu0 %vm464_vm0, %v700_v30  ;;  %2200 = vmatmul.mubr.msk.f32.gmra.mrb[26].mxu1 %vm1061_vm1, %v1054_v31 }
 0x12f   : > { %2202 = vmatprep.mubr.msk.f32.mxu1 %vm1061_vm1, %v1055_v32 }
 0x131   : > { %2148 = vmatmul.mubr.msk.f32.gmra.mrb[28].mxu0 %vm464_vm0, %v701_v33 }
 0x132   : > { %2150 = vmatprep.mubr.msk.f32.mxu0 %vm464_vm0, %v702_v34  ;;  %2203 = vmatmul.mubr.msk.f32.gmra.mrb[28].mxu1 %vm1061_vm1, %v1056_v35 }
 0x133   : > { %2205 = vmatprep.mubr.msk.f32.mxu1 %vm1061_vm1, %v1057_v36 }
 0x135   : > { %2151 = vmatmul.mubr.msk.f32.gmra.mrb[30].mxu0 %vm464_vm0, %v703_v37 }
 0x136   : > { %2153 = vmatprep.mubr.msk.f32.mxu0 %vm464_vm0, %v704_v38  ;;  %2206 = vmatmul.mubr.msk.f32.gmra.mrb[30].mxu1 %vm1061_vm1, %v1058_v39 }
 0x137   : > { %2208 = vmatprep.mubr.msk.f32.mxu1 %vm1061_vm1, %v1059_v40 }
 0x139   : > { %2154 = vmatmul.mubr.msk.f32.gmra.mrb[32].mxu0 %vm464_vm0, %v705_v41 }
 0x13a   : > { %2156 = vmatprep.mubr.msk.f32.mxu0 %vm464_vm0, %v706_v42  ;;  %2209 = vmatmul.mubr.msk.f32.gmra.mrb[32].mxu1 %vm1061_vm1, %v1060_v43 }
 0x13b   : > { %2243 = vmatprep.mubr.msk.f32.mxu1 %vm2523_vm2, %v2524_v46 }
 0x13d   : > { %2157 = vmatmul.mubr.msk.f32.gmra.mrb[34].mxu0 %vm464_vm0, %v707_v44 }
 0x13e   : > { %2278 = vmatprep.mubr.msk.f32.mxu0 %vm2523_vm2, %v2524_v46 }
 0x1d1   : > { %v2165_v12 = vpop.f32.mrb[2].mxu1 }
 0x1d2   : > { %v1224_v17 = vpop.f32.mrb[3].mxu1 }
 0x1d4   : > { %v2113_v56 = vpop.f32.mrb[4].mxu0 }
 0x1d5   : > { %v1384_v13 = vmul.f32 %v2165_v12, %v2113_v56  ;;  %v870_v57 = vpop.f32.mrb[5].mxu0  ;;  %v2168_v58 = vpop.f32.mrb[4].mxu1 }
 0x1d6   : > { %v1383_v59 = vmul.f32 %v1224_v17, %v870_v57  ;;  %v1234_v60 = vpop.f32.mrb[5].mxu1 }
 0x1d8   : > { %v2310_v62 = vpack.c.bf16 %v1384_v13, %v1383_v59  ;;  %v2116_v63 = vpop.f32.mrb[6].mxu0 }
 0x1d9   : > { %v1386_v0 = vmul.f32 %v2168_v58, %v2116_v63  ;;  %v880_v1 = vpop.f32.mrb[7].mxu0  ;;  %v2171_v2 = vpop.f32.mrb[6].mxu1 }
 0x1da   : > { %v1385_v3 = vmul.f32 %v1234_v60, %v880_v1  ;;  %2312 = vmatpush3.bf16.xpose.msk.msra.mxu1 %vm2968_vm4, %v2310_v62  ;;  %v1244_v4 = vpop.f32.mrb[7].mxu1 }
 0x1db   : > { %2313 = vmatprep.subr.bf16.mxu1 %v2522_v45 }
 0x1dc   : > { %v2314_v5 = vpack.c.bf16 %v1386_v0, %v1385_v3  ;;  %v2119_v6 = vpop.f32.mrb[8].mxu0 }
 0x1dd   : > { %v1388_v7 = vmul.f32 %v2171_v2, %v2119_v6  ;;  %v890_v8 = vpop.f32.mrb[9].mxu0  ;;  %v2174_v9 = vpop.f32.mrb[8].mxu1 }
 0x1de   : > { %v1387_v10 = vmul.f32 %v1244_v4, %v890_v8  ;;  %v1254_v11 = vpop.f32.mrb[9].mxu1 }
 0x1e0   : > { %v2318_v14 = vpack.c.bf16 %v1388_v7, %v1387_v10  ;;  %v2122_v15 = vpop.f32.mrb[10].mxu0 }
 0x1e1   : > { %v1390_v18 = vmul.f32 %v2174_v9, %v2122_v15  ;;  %v900_v19 = vpop.f32.mrb[11].mxu0  ;;  %v2177_v20 = vpop.f32.mrb[10].mxu1 }
 0x1e2   : > { %v1389_v21 = vmul.f32 %v1254_v11, %v900_v19  ;;  %2316 = vmatpush3.bf16.xpose.msk.msra.mxu1 %vm2968_vm4, %v2314_v5  ;;  %v1264_v22 = vpop.f32.mrb[11].mxu1 }
 0x1e3   : > { %2317 = vmatprep.subr.bf16.mxu1 %v2522_v45 }
 0x1e4   : > { %v2322_v23 = vpack.c.bf16 %v1390_v18, %v1389_v21  ;;  %v2125_v24 = vpop.f32.mrb[12].mxu0 }
 0x1e5   : > { %v1392_v25 = vmul.f32 %v2177_v20, %v2125_v24  ;;  %v910_v26 = vpop.f32.mrb[13].mxu0  ;;  %v2180_v27 = vpop.f32.mrb[12].mxu1 }
 0x1e6   : > { %v1391_v28 = vmul.f32 %v1264_v22, %v910_v26  ;;  %v1274_v29 = vpop.f32.mrb[13].mxu1 }
 0x1e8   : > { %v2326_v30 = vpack.c.bf16 %v1392_v25, %v1391_v28  ;;  %v2128_v31 = vpop.f32.mrb[14].mxu0 }
 0x1e9   : > { %v1394_v32 = vmul.f32 %v2180_v27, %v2128_v31  ;;  %v920_v33 = vpop.f32.mrb[15].mxu0  ;;  %v2183_v34 = vpop.f32.mrb[14].mxu1 }
 0x1ea   : > { %v1393_v35 = vmul.f32 %v1274_v29, %v920_v33  ;;  %2320 = vmatpush3.bf16.xpose.msk.msra.mxu1 %vm2968_vm4, %v2318_v14  ;;  %v1284_v36 = vpop.f32.mrb[15].mxu1 }
 0x1eb   : > { %2321 = vmatprep.subr.bf16.mxu1 %v2522_v45 }
 0x1ec   : > { %v2330_v37 = vpack.c.bf16 %v1394_v32, %v1393_v35  ;;  %v2131_v38 = vpop.f32.mrb[16].mxu0 }
 0x1ed   : > { %v2981_v39 = vmul.f32 %v2183_v34, %v2131_v38  ;;  %v930_v40 = vpop.f32.mrb[17].mxu0  ;;  %v2186_v41 = vpop.f32.mrb[16].mxu1 }
 0x1ee   : > { %v1395_v42 = vmul.f32 %v1284_v36, %v930_v40  ;;  %v1294_v43 = vpop.f32.mrb[17].mxu1 }
 0x1f0   : > { %v2334_v44 = vpack.c.bf16 %v2981_v39, %v1395_v42  ;;  %v2134_v46 = vpop.f32.mrb[18].mxu0 }
 0x1f1   : > { %v2984_v47 = vmul.f32 %v2186_v41, %v2134_v46  ;;  %v940_v48 = vpop.f32.mrb[19].mxu0  ;;  %v2189_v49 = vpop.f32.mrb[18].mxu1 }
 0x1f2   : > { %v2986_v50 = vmul.f32 %v1294_v43, %v940_v48  ;;  %2324 = vmatpush3.bf16.xpose.msk.msra.mxu1 %vm2968_vm4, %v2322_v23  ;;  %v1304_v51 = vpop.f32.mrb[19].mxu1  ;;  %v666_v46 = vpop.xlane.xlu0 %665  ;;  %v1418_v48 = vld [vmem:[%s3133_s10 + $0x8] sm:$0xff] }
 0x1f3   : > { %2325 = vmatprep.subr.bf16.mxu1 %v2522_v45 }
 0x1f4   : > { %v2338_v52 = vpack.c.bf16 %v2984_v47, %v2986_v50  ;;  %v2137_v53 = vpop.f32.mrb[20].mxu0  ;;  %v1417_v47 = vld [vmem:[%s3133_s10] sm:$0xff] }
 0x1f5   : > { %v1400_v54 = vmul.f32 %v2189_v49, %v2137_v53  ;;  %v950_v55 = vpop.f32.mrb[21].mxu0  ;;  %v2192_v12 = vpop.f32.mrb[20].mxu1  ;;  %v1546_v50 = vmul.f32 %v1417_v47, %v666_v46 }
 0x1f6   : > { %v1399_v16 = vmul.f32 %v1304_v51, %v950_v55  ;;  %v1314_v17 = vpop.f32.mrb[21].mxu1  ;;  %v669_v49 = vpop.xlane.xlu0 %668 }
 0x1f7   : > { %v1547_v51 = vmul.f32 %v1418_v48, %v669_v49 }
 0x1f8   : > { %v2342_v56 = vpack.c.bf16 %v1400_v54, %v1399_v16  ;;  %v2140_v13 = vpop.f32.mrb[22].mxu0 }
 0x1f9   : > { %v1402_v57 = vmul.f32 %v2192_v12, %v2140_v13  ;;  %v960_v58 = vpop.f32.mrb[23].mxu0  ;;  %v2195_v59 = vpop.f32.mrb[22].mxu1 }
 0x1fa   : > { %2328 = vmatpush3.bf16.xpose.msk.msra.mxu1 %vm2968_vm4, %v2326_v30  ;;  %2344 = vmatpush3.bf16.xpose.msk.msra.mxu0 %vm2968_vm4, %v2342_v56  ;;  %v1401_v60 = vmul.f32 %v1314_v17, %v960_v58  ;;  %v1324_v62 = vpop.f32.mrb[23].mxu1  ;;  %v672_v12 = vpop.xlane.xlu1 %671 }
 0x1fb   : > { %2329 = vmatprep.subr.bf16.mxu1 %v2522_v45  ;;  %2345 = vmatprep.subr.bf16.mxu0 %v2522_v45  ;;  %v1422_v17 = vpop.permute.xlu0 %1421 }
 0x1fc   : > { %v2346_v63 = vpack.c.bf16 %v1402_v57, %v1401_v60  ;;  %v2143_v0 = vpop.f32.mrb[24].mxu0 }
 0x1fd   : > { %v1404_v1 = vmul.f32 %v2195_v59, %v2143_v0  ;;  %v970_v2 = vpop.f32.mrb[25].mxu0  ;;  %v2198_v3 = vpop.f32.mrb[24].mxu1  ;;  %v1678_v59 = vmul.f32 %v1417_v47, %v672_v12 }
 0x1fe   : > { %v1403_v4 = vmul.f32 %v1324_v62, %v970_v2  ;;  %v1334_v5 = vpop.f32.mrb[25].mxu1  ;;  %v675_v56 = vpop.xlane.xlu1 %674 }
 0x1ff   : > { %v1679_v60 = vmul.f32 %v1418_v48, %v675_v56 }
 0x200   : > { %v2350_v6 = vpack.c.bf16 %v1404_v1, %v1403_v4  ;;  %v2146_v7 = vpop.f32.mrb[26].mxu0 }
 0x201   : > { %v1406_v8 = vmul.f32 %v2198_v3, %v2146_v7  ;;  %v980_v9 = vpop.f32.mrb[27].mxu0  ;;  %v2201_v10 = vpop.f32.mrb[26].mxu1 }
 0x202   : > { %2332 = vmatpush3.bf16.xpose.msk.msra.mxu1 %vm2968_vm4, %v2330_v37  ;;  %2348 = vmatpush3.bf16.xpose.msk.msra.mxu0 %vm2968_vm4, %v2346_v63  ;;  %v1405_v11 = vmul.f32 %v1334_v5, %v980_v9  ;;  %v1344_v14 = vpop.f32.mrb[27].mxu1  ;;  %v1680_v63 = vadd.f32 %v1679_v60, %v1678_v59 }
 0x203   : > { %2333 = vmatprep.subr.bf16.mxu1 %v2522_v45  ;;  %2349 = vmatprep.subr.bf16.mxu0 %v2522_v45 }
 0x204   : > { %v2354_v15 = vpack.c.bf16 %v1406_v8, %v1405_v11  ;;  %v2149_v18 = vpop.f32.mrb[28].mxu0  ;;  %v1681_v0 = vrot.slane %v1680_v63, 4 }
 0x205   : > { %v1408_v19 = vmul.f32 %v2201_v10, %v2149_v18  ;;  %v990_v20 = vpop.f32.mrb[29].mxu0  ;;  %v2204_v21 = vpop.f32.mrb[28].mxu1 }
 0x206   : > { %v1407_v22 = vmul.f32 %v1344_v14, %v990_v20  ;;  %v1354_v23 = vpop.f32.mrb[29].mxu1  ;;  %v1682_v1 = vadd.f32 %v1681_v0, %v1680_v63 }
 0x208   : > { %v2358_v24 = vpack.c.bf16 %v1408_v19, %v1407_v22  ;;  %v2152_v25 = vpop.f32.mrb[30].mxu0  ;;  %v1683_v2 = vrot.slane %v1682_v1, 2 }
 0x209   : > { %v1410_v26 = vmul.f32 %v2204_v21, %v2152_v25  ;;  %v1000_v27 = vpop.f32.mrb[31].mxu0  ;;  %v2207_v28 = vpop.f32.mrb[30].mxu1 }
 0x20a   : > { %2336 = vmatpush3.bf16.xpose.msk.msra.mxu1 %vm2968_vm4, %v2334_v44  ;;  %2352 = vmatpush3.bf16.xpose.msk.msra.mxu0 %vm2968_vm4, %v2350_v6  ;;  %v1409_v29 = vmul.f32 %v1354_v23, %v1000_v27  ;;  %v1364_v30 = vpop.f32.mrb[31].mxu1  ;;  %v1415_v44 = vld [vmem:[%s3129_s6] sm:$0xf]  ;;  %v1684_v3 = vadd.f32 %v1683_v2, %v1682_v1 }
 0x20b   : > { %2337 = vmatprep.subr.bf16.mxu1 %v2522_v45  ;;  %2353 = vmatprep.subr.bf16.mxu0 %v2522_v45 }
 0x20c   : > { %v2362_v31 = vpack.c.bf16 %v1410_v26, %v1409_v29  ;;  %v2155_v32 = vpop.f32.mrb[32].mxu0  ;;  %v1685_v4 = vrot.slane %v1684_v3, 1 }
 0x20d   : > { %v1412_v33 = vmul.f32 %v2207_v28, %v2155_v32  ;;  %v1010_v34 = vpop.f32.mrb[33].mxu0  ;;  %v2210_v35 = vpop.f32.mrb[32].mxu1 }
 0x20e   : > { %v1411_v36 = vmul.f32 %v1364_v30, %v1010_v34  ;;  %v1374_v37 = vpop.f32.mrb[33].mxu1  ;;  %v1686_v5 = vadd.f32 %v1685_v4, %v1684_v3 }
 0x210   : > { %v2366_v38 = vpack.c.bf16 %v1412_v33, %v1411_v36  ;;  %v2158_v39 = vpop.f32.mrb[34].mxu0  ;;  %vm1687_vm6 = vcmp.eq.f32.partialorder %v1686_v5, 0.0 }
 0x211   : > { %v1414_v40 = vmul.f32 %v2210_v35, %v2158_v39  ;;  %v1020_v41 = vpop.f32.mrb[35].mxu0 }
 0x212   : > { %2340 = vmatpush3.bf16.xpose.msk.msra.mxu1 %vm2968_vm4, %v2338_v52  ;;  %2356 = vmatpush3.bf16.xpose.msk.msra.mxu0 %vm2968_vm4, %v2354_v15  ;;  %v1413_v42 = vmul.f32 %v1374_v37, %v1020_v41  ;;  %v1548_v52 = vadd.f32 %v1547_v51, %v1546_v50 }
 0x213   : > { %2357 = vmatprep.subr.bf16.mxu0 %v2522_v45 }
 0x214   : > { %v2370_v43 = vpack.c.bf16 %v1414_v40, %v1413_v42 }
 0x219   : > { %2244 = vmatmul.mubr.msk.f32.vlgmr.msra.gmra.mrb[34].mxu1 %vm1424_vm3, %v1415_v44 }
 0x21a   : > { %2360 = vmatpush3.bf16.xpose.msk.msra.mxu0 %vm2968_vm4, %v2358_v24 }
 0x21b   : > { %2361 = vmatprep.subr.bf16.mxu0 %v2522_v45 }
 0x222   : > { %2364 = vmatpush3.bf16.xpose.msk.msra.mxu0 %vm2968_vm4, %v2362_v31 }
 0x223   : > { %2365 = vmatprep.subr.bf16.mxu0 %v2522_v45 }
 0x22a   : > { %2368 = vmatpush3.bf16.xpose.msk.msra.mxu0 %vm2968_vm4, %v2366_v38 }
 0x22b   : > { %2369 = vmatprep.subr.bf16.mxu0 %v2522_v45  ;;  %v1549_v45 = vrot.slane %v1548_v52, 4 }
 0x22d   : > { %v1550_v53 = vadd.f32 %v1549_v45, %v1548_v52 }
 0x22f   : > { %v1551_v61 = vrot.slane %v1550_v53, 2 }
 0x231   : > { %v1552_v54 = vadd.f32 %v1551_v61, %v1550_v53 }
 0x232   : > { %2372 = vmatpush3.bf16.xpose.msk.msra.mxu0 %vm2968_vm4, %v2370_v43 }
 0x233   : > { %v1553_v55 = vrot.slane %v1552_v54, 1 }
 0x235   : > { %v1554_v16 = vadd.f32 %v1553_v55, %v1552_v54 }
 0x237   : > { %vm1555_vm5 = vcmp.eq.f32.partialorder %v1554_v16, 0.0 }
 0x239   : > { %2279 = vmatmul.mubr.msk.f32.vlgmr.msra.gmra.mrb[36].mxu0 %vm1424_vm3, %v1415_v44 }
 0x2ec   : > { %v1542_v13 = vpop.f32.mrb[34].mxu1 }
 0x2ed   : > { %v1543_v57 = vadd.f32 %v1542_v13, %v1422_v17  ;;  %v2245_v58 = vpop.f32.mrb[35].mxu1 }
 0x2ef   : > { %v1558_v62 = vsel %vm1555_vm5, -inf, %v1543_v57 }
 0x2f0   : > { %1559 = vst [vmem:[%s434_s17] sm:$0xf] %v1558_v62 }
 0x30c   : > { %v1674_v6 = vpop.f32.mrb[36].mxu0 }
 0x30d   : > { %v1675_v7 = vadd.f32 %v1674_v6, %v1422_v17  ;;  %v2280_v8 = vpop.f32.mrb[37].mxu0 }
 0x30f   : > { %v1690_v9 = vsel %vm1687_vm6, -inf, %v1675_v7 }
 0x310   : > { %1691 = vst [vmem:[%s434_s17 + $0x4] sm:$0xf] %v1690_v9 }
 0x317   : > { %v1692_v10 = vld [vmem:[%s434_s17] sm:$0xff] }
 0x318   : > { %1693 = vmax.xlane.f32.xlu1 %v1692_v10 }
 0x3a5   : > { %v1694_v11 = vpop.xlane.xlu1 %1693 }
 0x3a6   : > { %v1695_v14 = vsub.f32 %v1692_v10, %v1694_v11 }
 0x3a8   : > { %v1696_v15 = vmul.f32 1.442695, %v1695_v14 }
 0x3aa   : > { %2422 = vpow2.f32 %v1696_v15 }
 0x3b4   : > { %v2423_v18 = vpop.eup %2422 }
 0x3b5   : > { %1698 = vadd.xlane.f32.xlu1 %v2423_v18 }
 0x3b6   : > { %2439 = shalt.err (!%p2436_p4)
}
 0x3b7   : > { %s2440_s17 = scalar_lea.hbm %s3053_s19, 128  ;;  %s2444_s30 = scalar_lea.hbm %s3135_s12, 256 }
 0x3b8   : > { %p2441_p7 = scmp.ne.s32.totalorder %s3053_s19, %s2440_s17  ;;  %p2445_p10 = scmp.lt.u32.totalorder %s3053_s19, %s3135_s12 }
 0x3b9   : > { %p2446_p11 = scmp.lt.u32.totalorder %s2444_s30, %s2440_s17  ;;  %p2448_p13 = scmp.lt.u32.totalorder %s2440_s17, %s3053_s19 }
 0x3ba   : > { %p2442_p8 = pnand %p2441_p7, %p2631_p5 }
 0x3bb   : > { %p2447_p12 = por %p2446_p11, %p2445_p10 }
 0x3bc   : > { %p2443_p9 = pneg %p2442_p8 }
 0x3bd   : > { %p2449_p0 = por %p2448_p13, %p2447_p12 }
 0x3bf   : > { %p2450_p1 = pnand %p2449_p0, %p2443_p9 }
 0x3c1   : > { %2453 = shalt.err (!%p2450_p1)
}
 0x3c2   : > { %2374 = dma.vmem_to_hbm [thread:$0]  (%p2631_p5), %s1736_s20, 128, %s3053_s19, %s1709_s23  }
 0x3c3   : > { %s3148_s16 = sshll.u32 %s3042_s15, 3  ;;  %s3149_s26 = sshll.u32 %s2614_s25, 7 }
 0x3c4   : > { %s427_s27 = scalar_lea.vmem [#allocation2], %s3148_s16  ;;  %s3080_s30 = scalar_lea.hbm %s3134_s11, %s3149_s26 }
 0x3c5   : > { %s1722_s18 = sshll.u32 %s427_s27, 4  ;;  %s1704_s19 = scalar_lea.sflag [#allocation3], %s3042_s15  ;;  %s3082_s18 = int_to_ptr.vmem [resolvable:$true] %s1722_s18 }
 0x3c6   : > { %s2454_s20 = scalar_lea.vmem %s3082_s18, 128  ;;  %s2527_s23 = smov [#allocation2]  }
 0x3c7   : > { %p2455_p2 = scmp.ne.s32.totalorder %s3082_s18, %s2454_s20  ;;  %s2458_s29 = sshll.u32 %s2527_s23, 4  ;;  %s2459_s29 = int_to_ptr.vmem [resolvable:$false] %s2458_s29 }
 0x3c8   : > { %s2460_s25 = scalar_lea.vmem %s2459_s29, 256  ;;  %p2461_p7 = scmp.lt.s32.totalorder %s3082_s18, %s2459_s29 }
 0x3c9   : > { %p2456_p3 = pnand %p2455_p2, %p2631_p5  ;;  %p2462_p8 = scmp.lt.s32.totalorder %s2460_s25, %s2454_s20 }
 0x3cb   : > { %p2457_p4 = pneg %p2456_p3  ;;  %p2463_p9 = por %p2462_p8, %p2461_p7 }
 0x3cd   : > { %p2464_p10 = pnand %p2463_p9, %p2457_p4 }
 0x442   : > { %v1699_v19 = vpop.xlane.xlu1 %1698 }
 0x443   : > { %2424 = vrcp.f32 %v1699_v19 }
 0x44d   : > { %v2425_v20 = vpop.eup %2424 }
 0x44e   : > { %v1701_v21 = vmul.f32 %v2425_v20, %v2423_v18 }
 0x450   : > { %1702 = vst [vmem:[%s427_s27] sm:$0xff] %v1701_v21 }
 0x451   : > { %2467 = shalt.err (!%p2464_p10)
}
 0x452   : > { %s2468_s15 = scalar_lea.hbm %s3080_s30, 128  ;;  %s2472_s26 = scalar_lea.hbm %s3134_s11, 256 }
 0x453   : > { %p2469_p11 = scmp.ne.s32.totalorder %s3080_s30, %s2468_s15  ;;  %p2473_p0 = scmp.lt.u32.totalorder %s3080_s30, %s3134_s11 }
 0x454   : > { %p2474_p1 = scmp.lt.u32.totalorder %s2472_s26, %s2468_s15  ;;  %p2476_p3 = scmp.lt.u32.totalorder %s2468_s15, %s3080_s30 }
 0x455   : > { %p2470_p12 = pnand %p2469_p11, %p2631_p5 }
 0x456   : > { %p2475_p2 = por %p2474_p1, %p2473_p0 }
 0x457   : > { %p2471_p13 = pneg %p2470_p12 }
 0x458   : > { %p2477_p4 = por %p2476_p3, %p2475_p2 }
 0x45a   : > { %p2478_p7 = pnand %p2477_p4, %p2471_p13 }
 0x45c   : > { %2481 = shalt.err (!%p2478_p7)
}
 0x45d   : > { %2373 = dma.vmem_to_hbm [thread:$0]  (%p2631_p5), %s3082_s18, 128, %s3080_s30, %s1704_s19  }
 0x45e PF: > { %p2384_p8 = scmp.ge.s32.totalorder %s2520_s24, 2  ;;  %s1747_s20 = sand.u32 1, %s2508_s21  }
 0x45f   : > { %s1748_s23 = scalar_lea.sflag [#allocation3], %s1747_s20 }
 0x460   : > { %p2378_p9 = pnand %p2384_p8, %p2635_p6 }
 0x462   : > { %2499 = dma.done.wait (!%p2378_p9), %s1748_s23, 128  }
 0x463   : > { %2501 = vsyncadd (!%p2378_p9), %s1748_s23, 4294967168  ;;  %s1757_s29 = scalar_lea.sflag [#allocation5], %s1747_s20 }
 0x464   : > { %2503 = dma.done.wait (!%p2378_p9), %s1757_s29, 128  }
 0x465   : > { %2505 = vsyncadd (!%p2378_p9), %s1757_s29, 4294967168  ;;  %s3150_s24 = sld [smem:[#allocation9_spill]]  ;;  %s3151_s13 = sld [smem:[#allocation8_spill]] }
 0x466   : > { %s3152_s23 = sld [smem:[#allocation10_spill]]  ;;  %s3153_s21 = smov %s2512_s22 }
 0x46b   : > { %p26_p5 = scmp.ge.s32.totalorder %s3150_s24, 4   ;;  %s3154_s22 = smov %s3151_s13 }
 0x46d   :  { %28 = sbr.rel (!%p26_p5) target bundleno = 5 (0x5), region = 119 }
 0x474   :  { %1762 = vsyncpa [#allocation3], 1 }
 0x475   :  { %1764 = vsyncpa [#allocation3 + $0x1], 1 }
 0x476   :  { %1765 = vsyncpa [#allocation5], 1 }
 0x477   :  { %1767 = vsyncpa [#allocation5 + $0x1], 1 }

</bundles_post_ra>
